<compile_context>
chip_gen: v7x
topology: tpu7x:2x2x1
jax: 0.10.0
libtpu: 0.0.40
codegen_flags: <defaults>
</compile_context>

<pallas_src>
import functools

import jax
import jax.numpy as jnp
from jax import lax
from jax.experimental import pallas as pl
from jax.experimental.pallas import tpu as pltpu


def _round_up(x, m):
    return ((x + m - 1) // m) * m


def _choose_block_b(B, block_b):
    """Pick the batch tile: sublane-aligned, capped at block_b, and with
    >= 2 grid steps whenever the batch can be split (so 2-TC chips shard)."""
    Bq = _round_up(B, 8)
    if Bq <= 8:
        return 8
    bm = min(block_b, Bq)
    if Bq <= bm:                       # would be a single grid step
        bm = _round_up((Bq + 1) // 2, 8)
    return bm


def bias_nn_kernel(tok_ref, a_ref, b1_ref, w2_ref, b2_ref, out_ref):
    bm, S = tok_ref.shape              # (batch tile, seq)
    Vp, H = a_ref.shape                # (padded vocab, hidden)
    mxu_dtype = a_ref.dtype            # f32 or bf16 (weights' storage dtype)

    tok = tok_ref[...]                                         # (bm, S) int32
    iota_v = lax.broadcasted_iota(jnp.int32, (bm, Vp), 1)      # lane index

    # counts[b, v] = #{s : tok[b, s] == v}.  Accumulate S (bm, Vp) compares in
    # int32 (no per-iteration float convert) -- never materialize a
    # (bm, S, Vp) one-hot and never do a cross-sublane reduce.
    counts_i = jnp.zeros((bm, Vp), jnp.int32)
    if S <= 16:
        for s in range(S):             # small static S -> fully unrolled
            counts_i = counts_i + (tok[:, s:s + 1] == iota_v).astype(jnp.int32)
    else:
        # TODO(synk): for very long sequences, tile S via the grid instead.
        def body(s, c):
            col = tok_ref[:, pl.ds(s, 1)]                       # (bm, 1)
            return c + (col == iota_v).astype(jnp.int32)
        counts_i = lax.fori_loop(0, S, body, counts_i, unroll=8)

    # Single cast to the MXU input dtype; counts <= S so exact even in bf16.
    counts = counts_i.astype(mxu_dtype)

    # A = (emb @ W1) / S is fused offline, so counts @ A == mean-embed @ W1.
    h = jnp.dot(counts, a_ref[...], preferred_element_type=jnp.float32)
    h = jnp.maximum(h + b1_ref[...], 0.0)                       # (bm, H) f32

    # Lane-dense padded logits store (bm, Cp), Cp a multiple of 128.
    out_ref[...] = (jnp.dot(h.astype(w2_ref.dtype), w2_ref[...],
                            preferred_element_type=jnp.float32)
                    + b2_ref[...])


def prepare_params(emb, w1, b1, w2, b2, seq_len, param_dtype=jnp.float32):
    """One-time parameter prep (hoisted out of the per-call path).

    emb (V,E); w1 (E,H); b1 (1,H); w2 (H,C); b2 (1,C) -- weights stored
    (in, out), i.e. transposed vs PyTorch's (out, in), so y = x @ W + b.
    Returns (A_p, b1, w2_p, b2_p) padded/fused, ready for bias_nn_forward.
    Use param_dtype=jnp.bfloat16 for the fast MXU path on v6e/v7x.
    """
    V, E = emb.shape
    H = w1.shape[1]
    C = w2.shape[1]

    # Offline fusion: embedding matmul + mean(1/S) folded into the first Linear.
    A = (jnp.asarray(emb, jnp.float32) @ jnp.asarray(w1, jnp.float32)) * (1.0 / seq_len)

    Vp = _round_up(V, 128)             # full MXU K, lane-dense counts tile
    Cp = _round_up(C, 128)             # lane-dense output store
    A_p = jnp.zeros((Vp, H), jnp.float32).at[:V, :].set(A).astype(param_dtype)
    w2_p = (jnp.zeros((H, Cp), jnp.float32)
            .at[:, :C].set(jnp.asarray(w2, jnp.float32)).astype(param_dtype))
    b1_p = jnp.asarray(b1, jnp.float32).reshape(1, H)           # biases stay f32
    b2_p = jnp.zeros((1, Cp), jnp.float32).at[:, :C].set(jnp.asarray(b2, jnp.float32))
    return A_p, b1_p, w2_p, b2_p


@functools.partial(jax.jit, static_argnames=("num_classes", "block_b"))
def bias_nn_forward(tokens, A_p, b1, w2_p, b2_p, *, num_classes, block_b=128):
    """tokens (B, S) int; padded params from prepare_params. Returns (B, C) f32."""
    B, S = tokens.shape
    Vp, H = A_p.shape
    Cp = w2_p.shape[1]

    bm = _choose_block_b(B, block_b)
    Bp = _round_up(B, bm)
    tok_p = jnp.zeros((Bp, S), jnp.int32).at[:B, :].set(tokens.astype(jnp.int32))

    out = pl.pallas_call(
        bias_nn_kernel,
        out_shape=jax.ShapeDtypeStruct((Bp, Cp), jnp.float32),
        grid_spec=pltpu.PrefetchScalarGridSpec(
            num_scalar_prefetch=0,
            grid=(Bp // bm,),
            in_specs=[
                pl.BlockSpec((bm, S), lambda i: (i, 0)),    # tokens tile
                pl.BlockSpec((Vp, H), lambda i: (0, 0)),    # fused A (resident)
                pl.BlockSpec((1, H), lambda i: (0, 0)),     # b1
                pl.BlockSpec((H, Cp), lambda i: (0, 0)),    # padded W2 (resident)
                pl.BlockSpec((1, Cp), lambda i: (0, 0)),    # padded b2
            ],
            out_specs=pl.BlockSpec((bm, Cp), lambda i: (i, 0)),
        ),
        compiler_params=pltpu.CompilerParams(
            dimension_semantics=("parallel",)),             # megacore / 2-TC v7x
    )(tok_p, A_p, b1, w2_p, b2_p)

    # Padded rows/lanes sliced away (keep: padded rows produce discarded logits).
    return out[:B, :num_classes]


def reference_forward(tokens, emb, w1, b1, w2, b2):
    x = jnp.take(emb, tokens, axis=0)            # (B, S, E)
    x = jnp.mean(x, axis=1)                      # (B, E)
    h = jax.nn.relu(x @ w1 + b1)                 # (B, H)
    return h @ w2 + b2                           # (B, C)


if __name__ == "__main__":
    # Small shapes consistent with the module's forward:
    B, S = 2, 8                # batch, sequence length
    V, E = 50, 25              # vocab_size, embedding_dim
    H, C = 128, 3              # hidden_size, num_classes

    key = jax.random.PRNGKey(0)
    k_tok, k_emb, k_w1, k_b1, k_w2, k_b2 = jax.random.split(key, 6)

    tokens = jax.random.randint(k_tok, (B, S), 0, V, dtype=jnp.int32)
    emb = (0.02 * jax.random.normal(k_emb, (V, E))).astype(jnp.float32)
    w1 = (0.02 * jax.random.normal(k_w1, (E, H))).astype(jnp.float32)
    b1 = (0.02 * jax.random.normal(k_b1, (1, H))).astype(jnp.float32)
    w2 = (0.02 * jax.random.normal(k_w2, (H, C))).astype(jnp.float32)
    b2 = (0.02 * jax.random.normal(k_b2, (1, C))).astype(jnp.float32)

    ref = reference_forward(tokens, emb, w1, b1, w2, b2)

    # --- exact f32 path (default) -------------------------------------------
    params_f32 = prepare_params(emb, w1, b1, w2, b2, S, param_dtype=jnp.float32)
    out = bias_nn_forward(tokens, *params_f32, num_classes=C)
    out = jax.block_until_ready(out)
    assert out.shape == (B, C)
    assert jnp.allclose(out, ref, atol=1e-5, rtol=1e-5)

    # --- bf16 MXU-operand path (fast path on v6e/v7x; looser tolerance) ------
    params_bf16 = prepare_params(emb, w1, b1, w2, b2, S, param_dtype=jnp.bfloat16)
    out_bf16 = jax.block_until_ready(
        bias_nn_forward(tokens, *params_bf16, num_classes=C))
    assert out_bf16.shape == (B, C)
    assert jnp.allclose(out_bf16, ref, atol=2e-2, rtol=2e-2)

    print("KERNEL_OK")
</pallas_src>

<mosaic_0001>
module attributes {stable_mosaic.version = 11 : i64} {
  func.func @bias_nn_kernel(%arg0: i32, %arg1: memref<8x8xi32, #tpu.memory_space<vmem>>, %arg2: memref<128x128xf32, #tpu.memory_space<vmem>>, %arg3: memref<1x128xf32, #tpu.memory_space<vmem>>, %arg4: memref<128x128xf32, #tpu.memory_space<vmem>>, %arg5: memref<1x128xf32, #tpu.memory_space<vmem>>, %arg6: memref<8x128xf32, #tpu.memory_space<vmem>>) attributes {dimension_semantics = [#tpu.dimension_semantics<parallel>], iteration_bounds = array<i64: 1>, scalar_prefetch = 0 : i64, scratch_operands = 0 : i64, tpu.core_type = #tpu.core_type<tc>, window_params = [{transform_indices = @transform_0, window_bounds = array<i64: 8, 8>}, {pipeline_mode = #tpu.pipeline_mode<synchronous>, transform_indices = @transform_1, window_bounds = array<i64: 128, 128>}, {pipeline_mode = #tpu.pipeline_mode<synchronous>, transform_indices = @transform_2, window_bounds = array<i64: 1, 128>}, {pipeline_mode = #tpu.pipeline_mode<synchronous>, transform_indices = @transform_3, window_bounds = array<i64: 128, 128>}, {pipeline_mode = #tpu.pipeline_mode<synchronous>, transform_indices = @transform_4, window_bounds = array<i64: 1, 128>}, {transform_indices = @transform_5, window_bounds = array<i64: 8, 128>}]} {
    %c0 = arith.constant 0 : index
    %c0_0 = arith.constant 0 : index
    %0 = vector.load %arg1[%c0, %c0_0] : memref<8x8xi32, #tpu.memory_space<vmem>>, vector<8x8xi32>
    %1 = tpu.iota {dimensions = array<i32: 1>} : vector<8x128xi32>
    %c0_i32 = arith.constant 0 : i32
    %2 = vector.broadcast %c0_i32 : i32 to vector<8x128xi32>
    %3 = vector.extract_strided_slice %0 {offsets = [0, 0], sizes = [8, 1], strides = [1, 1]} : vector<8x8xi32> to vector<8x1xi32>
    %4 = vector.broadcast %3 : vector<8x1xi32> to vector<8x128xi32>
    %5 = arith.cmpi eq, %4, %1 : vector<8x128xi32>
    %6 = arith.extui %5 : vector<8x128xi1> to vector<8x128xi32>
    %7 = arith.addi %2, %6 : vector<8x128xi32>
    %8 = vector.extract_strided_slice %0 {offsets = [0, 1], sizes = [8, 1], strides = [1, 1]} : vector<8x8xi32> to vector<8x1xi32>
    %9 = vector.broadcast %8 : vector<8x1xi32> to vector<8x128xi32>
    %10 = arith.cmpi eq, %9, %1 : vector<8x128xi32>
    %11 = arith.extui %10 : vector<8x128xi1> to vector<8x128xi32>
    %12 = arith.addi %7, %11 : vector<8x128xi32>
    %13 = vector.extract_strided_slice %0 {offsets = [0, 2], sizes = [8, 1], strides = [1, 1]} : vector<8x8xi32> to vector<8x1xi32>
    %14 = vector.broadcast %13 : vector<8x1xi32> to vector<8x128xi32>
    %15 = arith.cmpi eq, %14, %1 : vector<8x128xi32>
    %16 = arith.extui %15 : vector<8x128xi1> to vector<8x128xi32>
    %17 = arith.addi %12, %16 : vector<8x128xi32>
    %18 = vector.extract_strided_slice %0 {offsets = [0, 3], sizes = [8, 1], strides = [1, 1]} : vector<8x8xi32> to vector<8x1xi32>
    %19 = vector.broadcast %18 : vector<8x1xi32> to vector<8x128xi32>
    %20 = arith.cmpi eq, %19, %1 : vector<8x128xi32>
    %21 = arith.extui %20 : vector<8x128xi1> to vector<8x128xi32>
    %22 = arith.addi %17, %21 : vector<8x128xi32>
    %23 = vector.extract_strided_slice %0 {offsets = [0, 4], sizes = [8, 1], strides = [1, 1]} : vector<8x8xi32> to vector<8x1xi32>
    %24 = vector.broadcast %23 : vector<8x1xi32> to vector<8x128xi32>
    %25 = arith.cmpi eq, %24, %1 : vector<8x128xi32>
    %26 = arith.extui %25 : vector<8x128xi1> to vector<8x128xi32>
    %27 = arith.addi %22, %26 : vector<8x128xi32>
    %28 = vector.extract_strided_slice %0 {offsets = [0, 5], sizes = [8, 1], strides = [1, 1]} : vector<8x8xi32> to vector<8x1xi32>
    %29 = vector.broadcast %28 : vector<8x1xi32> to vector<8x128xi32>
    %30 = arith.cmpi eq, %29, %1 : vector<8x128xi32>
    %31 = arith.extui %30 : vector<8x128xi1> to vector<8x128xi32>
    %32 = arith.addi %27, %31 : vector<8x128xi32>
    %33 = vector.extract_strided_slice %0 {offsets = [0, 6], sizes = [8, 1], strides = [1, 1]} : vector<8x8xi32> to vector<8x1xi32>
    %34 = vector.broadcast %33 : vector<8x1xi32> to vector<8x128xi32>
    %35 = arith.cmpi eq, %34, %1 : vector<8x128xi32>
    %36 = arith.extui %35 : vector<8x128xi1> to vector<8x128xi32>
    %37 = arith.addi %32, %36 : vector<8x128xi32>
    %38 = vector.extract_strided_slice %0 {offsets = [0, 7], sizes = [8, 1], strides = [1, 1]} : vector<8x8xi32> to vector<8x1xi32>
    %39 = vector.broadcast %38 : vector<8x1xi32> to vector<8x128xi32>
    %40 = arith.cmpi eq, %39, %1 : vector<8x128xi32>
    %41 = arith.extui %40 : vector<8x128xi1> to vector<8x128xi32>
    %42 = arith.addi %37, %41 : vector<8x128xi32>
    %43 = arith.sitofp %42 : vector<8x128xi32> to vector<8x128xf32>
    %c0_1 = arith.constant 0 : index
    %c0_2 = arith.constant 0 : index
    %44 = vector.load %arg2[%c0_1, %c0_2] : memref<128x128xf32, #tpu.memory_space<vmem>>, vector<128x128xf32>
    %cst = arith.constant dense<0.000000e+00> : vector<8x128xf32>
    %45 = tpu.matmul %43, %44, %cst {dimension_numbers = #tpu.dot_dimension_numbers<[1], [0], [0], [1], [0, 0, 1, 1], [], []>} : vector<8x128xf32>, vector<128x128xf32>, vector<8x128xf32> -> vector<8x128xf32>
    %c0_3 = arith.constant 0 : index
    %c0_4 = arith.constant 0 : index
    %46 = vector.load %arg3[%c0_3, %c0_4] : memref<1x128xf32, #tpu.memory_space<vmem>>, vector<1x128xf32>
    %47 = vector.broadcast %46 : vector<1x128xf32> to vector<8x128xf32>
    %48 = arith.addf %45, %47 : vector<8x128xf32>
    %cst_5 = arith.constant 0.000000e+00 : f32
    %49 = vector.broadcast %cst_5 : f32 to vector<8x128xf32>
    %50 = arith.maximumf %48, %49 : vector<8x128xf32>
    %c0_6 = arith.constant 0 : index
    %c0_7 = arith.constant 0 : index
    %51 = vector.load %arg4[%c0_6, %c0_7] : memref<128x128xf32, #tpu.memory_space<vmem>>, vector<128x128xf32>
    %cst_8 = arith.constant dense<0.000000e+00> : vector<8x128xf32>
    %52 = tpu.matmul %50, %51, %cst_8 {dimension_numbers = #tpu.dot_dimension_numbers<[1], [0], [0], [1], [0, 0, 1, 1], [], []>} : vector<8x128xf32>, vector<128x128xf32>, vector<8x128xf32> -> vector<8x128xf32>
    %c0_9 = arith.constant 0 : index
    %c0_10 = arith.constant 0 : index
    %53 = vector.load %arg5[%c0_9, %c0_10] : memref<1x128xf32, #tpu.memory_space<vmem>>, vector<1x128xf32>
    %54 = vector.broadcast %53 : vector<1x128xf32> to vector<8x128xf32>
    %55 = arith.addf %52, %54 : vector<8x128xf32>
    %c0_11 = arith.constant 0 : index
    %c0_12 = arith.constant 0 : index
    %56 = vector.load %arg6[%c0_11, %c0_12] : memref<8x128xf32, #tpu.memory_space<vmem>>, vector<8x128xf32>
    tpu.vector_store %arg6[%c0_11, %c0_12], %55 {strides = array<i32>} : memref<8x128xf32, #tpu.memory_space<vmem>>, vector<8x128xf32>,
    return
  }
  func.func @transform_0(%arg0: i32) -> (i32, i32) {
    %c0_i32 = arith.constant 0 : i32
    %c0_i32_0 = arith.constant 0 : i32
    return %arg0, %c0_i32 : i32, i32
  }
  func.func @transform_1(%arg0: i32) -> (i32, i32) {
    %c0_i32 = arith.constant 0 : i32
    %c0_i32_0 = arith.constant 0 : i32
    %c0_i32_1 = arith.constant 0 : i32
    return %c0_i32, %c0_i32_0 : i32, i32
  }
  func.func @transform_2(%arg0: i32) -> (i32, i32) {
    %c0_i32 = arith.constant 0 : i32
    %c0_i32_0 = arith.constant 0 : i32
    %c0_i32_1 = arith.constant 0 : i32
    return %c0_i32, %c0_i32_0 : i32, i32
  }
  func.func @transform_3(%arg0: i32) -> (i32, i32) {
    %c0_i32 = arith.constant 0 : i32
    %c0_i32_0 = arith.constant 0 : i32
    %c0_i32_1 = arith.constant 0 : i32
    return %c0_i32, %c0_i32_0 : i32, i32
  }
  func.func @transform_4(%arg0: i32) -> (i32, i32) {
    %c0_i32 = arith.constant 0 : i32
    %c0_i32_0 = arith.constant 0 : i32
    %c0_i32_1 = arith.constant 0 : i32
    return %c0_i32, %c0_i32_0 : i32, i32
  }
  func.func @transform_5(%arg0: i32) -> (i32, i32) {
    %c0_i32 = arith.constant 0 : i32
    %c0_i32_0 = arith.constant 0 : i32
    return %arg0, %c0_i32 : i32, i32
  }
}

</mosaic_0001>

<bundles_post_ra>
// kernel: bias_nn_forward.1
= control target key start
LH: loop header
LB: loop body
LE: loop exit
PB: predicated region body
PF: predicated region fallthrough
CT: control target
= control target key end

     0   :  { %10 = vsyncpa [#allocation3], 0  ;;  %s625_s0 = inlined_call_operand.vmem [shape: s32[8,8], index: 0, kind: input, shape index: {}]   ;;  %s626_s1 = inlined_call_operand.hbm [shape: f32[128,128], index: 1, kind: input, shape index: {}]   ;;  %s627_s2 = inlined_call_operand.vmem [shape: f32[1,128], index: 2, kind: input, shape index: {}]   ;;  %s628_s3 = inlined_call_operand.hbm [shape: f32[128,128], index: 3, kind: input, shape index: {}]   ;;  %s629_s4 = inlined_call_operand.vmem [shape: f32[1,128], index: 4, kind: input, shape index: {}]   ;;  %s630_s5 = inlined_call_operand.vmem [shape: f32[8,128], index: 5, kind: output, shape index: {}]  }
   0x1   :  { %11 = vsyncpa [#allocation5], 0  ;;  %s519_s18 = smov [#allocation2]   ;;  %s471_s22 = scalar_lea.hbm %s626_s1, 2048 }
   0x2   :  { %s19_s19 = sshll.u32 %s519_s18, 4  ;;  %p472_p0 = scmp.ne.s32.totalorder %s626_s1, %s471_s22  ;;  %s20_s19 = int_to_ptr.vmem [resolvable:$true] %s19_s19 }
   0x3   :  { %p475_p1 = scmp.lt.u32.totalorder %s471_s22, %s626_s1 }
   0x5   :  { %p477_p2 = pnand %p475_p1, %p472_p0 }
   0x7   :  { %480 = shalt.err (!%p477_p2)
}
   0x8   :  { %s481_s27 = scalar_lea.vmem %s20_s19, 2048  ;;  %p486_p4 = scmp.lt.s32.totalorder %s20_s19, %s20_s19 }
   0x9   :  { %p482_p3 = scmp.ne.s32.totalorder %s20_s19, %s481_s27  ;;  %p487_p5 = scmp.lt.s32.totalorder %s481_s27, %s481_s27 }
   0xb   :  { %p488_p6 = por %p487_p5, %p486_p4 }
   0xd   :  { %p489_p7 = pnand %p488_p6, %p482_p3 }
   0xf   :  { %492 = shalt.err (!%p489_p7)
}
  0x10   :  { %s520_s28 = smov 128   ;;  %s521_s29 = smov 8  }
  0x11   :  { %25 = dma.hbm_to_vmem [thread:$0]  %s626_s1, 2048, %s20_s19, [#allocation3], %s520_s28, %s520_s28, %s521_s29  }
  0x12   :  { %s522_s7 = smov [#allocation4]   ;;  %s493_s11 = scalar_lea.hbm %s628_s3, 2048 }
  0x13   :  { %s33_s8 = sshll.u32 %s522_s7, 4  ;;  %p494_p8 = scmp.ne.s32.totalorder %s628_s3, %s493_s11  ;;  %s34_s8 = int_to_ptr.vmem [resolvable:$true] %s33_s8 }
  0x14   :  { %p497_p9 = scmp.lt.u32.totalorder %s493_s11, %s628_s3 }
  0x16   :  { %p499_p10 = pnand %p497_p9, %p494_p8 }
  0x18   :  { %502 = shalt.err (!%p499_p10)
}
  0x19   :  { %s503_s16 = scalar_lea.vmem %s34_s8, 2048  ;;  %p508_p12 = scmp.lt.s32.totalorder %s34_s8, %s34_s8 }
  0x1a   :  { %p504_p11 = scmp.ne.s32.totalorder %s34_s8, %s503_s16  ;;  %p509_p13 = scmp.lt.s32.totalorder %s503_s16, %s503_s16 }
  0x1c   :  { %p510_p0 = por %p509_p13, %p508_p12 }
  0x1e   :  { %p511_p1 = pnand %p510_p0, %p504_p11 }
  0x20   :  { %514 = shalt.err (!%p511_p1)
}
  0x21   :  { %39 = dma.hbm_to_vmem [thread:$0]  %s628_s3, 2048, %s34_s8, [#allocation5], %s520_s28, %s520_s28, %s521_s29  }
  0x22   :  { %515 = dma.done.wait [#allocation3], 2048  }
  0x23   :  { %516 = vsyncadd [#allocation3], 4294965248 }
  0x24   :  { %517 = dma.done.wait [#allocation5], 2048  }
  0x25   :  { %518 = vsyncadd [#allocation5], 4294965248  ;;  %v523_v0 = vmov 2   ;;  %v524_v1 = vmov 0   ;;  %v525_v2 = vmov 0.0|0.0   ;;  %v48_v3 = vld [vmem:[%s625_s0] sm:$0xff]  ;;  %v49_v56 = vlaneseq }
  0x26   :  { %464 = vset.pattern.permute.xlu1 %v523_v0  ;;  %462 = vset.pattern.permute.xlu0 %v524_v1  ;;  %v99_v4 = vld [vmem:[#allocation2] sm:$0xff]  ;;  %v100_v5 = vld [vmem:[#allocation2 + $0x8] sm:$0xff]  ;;  %v101_v7 = vld [vmem:[#allocation2 + $0x10] sm:$0xff]  ;;  %v526_v10 = vmov 3   ;;  %v527_v11 = vmov 1   ;;  %v528_v17 = vmov 4  }
  0x27   :  { %399 = vmatprep.subr.bf16.mxu0 %v525_v2  ;;  %423 = vmatprep.subr.bf16.mxu1 %v525_v2  ;;  %v400_v6 = vpack.c.bf16 %v100_v5, %v99_v4  ;;  %v102_v8 = vld [vmem:[#allocation2 + $0x18] sm:$0xff]  ;;  %v103_v12 = vld [vmem:[#allocation2 + $0x20] sm:$0xff]  ;;  %v104_v13 = vld [vmem:[#allocation2 + $0x28] sm:$0xff]  ;;  %v529_v18 = vmov 5   ;;  %v530_v22 = vmov 6   ;;  %v531_v23 = vmov 7  }
  0x28   :  { %63 = vperm.xlu1 %464, %v48_v3   ;;  %52 = vperm.xlu0 %462, %v48_v3   ;;  %v403_v9 = vpack.c.bf16 %v102_v8, %v101_v7  ;;  %v406_v14 = vpack.c.bf16 %v104_v13, %v103_v12  ;;  %v105_v15 = vld [vmem:[#allocation2 + $0x30] sm:$0xff]  ;;  %v106_v16 = vld [vmem:[#allocation2 + $0x38] sm:$0xff]  ;;  %v107_v20 = vld [vmem:[#allocation2 + $0x40] sm:$0xff]  ;;  %vm532_vm0 = vmmov 0   ;;  %v533_v33 = vmov 0.0  }
  0x29   :  { %401 = vmatpush3.bf16.msra.mxu0 %v400_v6  ;;  %v409_v19 = vpack.c.bf16 %v106_v16, %v105_v15  ;;  %v108_v21 = vld [vmem:[#allocation2 + $0x48] sm:$0xff]  ;;  %v109_v25 = vld [vmem:[#allocation2 + $0x50] sm:$0xff]  ;;  %v110_v26 = vld [vmem:[#allocation2 + $0x58] sm:$0xff]  ;;  %361 = vmatprep.mubr.msk.f32.mxu0 %vm532_vm0, %v533_v33  ;;  %v50_v59 = vand.u32 127, %v49_v56 }
  0x2a   :  { %402 = vmatprep.subr.bf16.mxu0 %v525_v2  ;;  %v412_v24 = vpack.c.bf16 %v108_v21, %v107_v20  ;;  %v415_v27 = vpack.c.bf16 %v110_v26, %v109_v25  ;;  %v111_v28 = vld [vmem:[#allocation2 + $0x60] sm:$0xff]  ;;  %v112_v29 = vld [vmem:[#allocation2 + $0x68] sm:$0xff]  ;;  %v113_v31 = vld [vmem:[#allocation2 + $0x70] sm:$0xff]  ;;  %396 = vmatprep.mubr.msk.f32.mxu1 %vm532_vm0, %v533_v33 }
  0x2b   :  { %v418_v30 = vpack.c.bf16 %v112_v29, %v111_v28  ;;  %v114_v32 = vld [vmem:[#allocation2 + $0x78] sm:$0xff]  ;;  %v193_v34 = vld [vmem:[#allocation4] sm:$0xff]  ;;  %v194_v35 = vld [vmem:[#allocation4 + $0x8] sm:$0xff] }
  0x2c   :  { %465 = vset.pattern.permute.xlu1 %v526_v10  ;;  %463 = vset.pattern.permute.xlu0 %v527_v11  ;;  %v195_v36 = vld [vmem:[#allocation4 + $0x10] sm:$0xff]  ;;  %v421_v37 = vpack.c.bf16 %v114_v32, %v113_v31  ;;  %v424_v38 = vpack.c.bf16 %v194_v35, %v193_v34  ;;  %v196_v39 = vld [vmem:[#allocation4 + $0x18] sm:$0xff]  ;;  %v197_v41 = vld [vmem:[#allocation4 + $0x20] sm:$0xff] }
  0x2d   :  { %69 = vperm.xlu1 %465, %v48_v3   ;;  %57 = vperm.xlu0 %463, %v48_v3   ;;  %v427_v40 = vpack.c.bf16 %v196_v39, %v195_v36  ;;  %v198_v42 = vld [vmem:[#allocation4 + $0x28] sm:$0xff]  ;;  %v199_v44 = vld [vmem:[#allocation4 + $0x30] sm:$0xff]  ;;  %v200_v45 = vld [vmem:[#allocation4 + $0x38] sm:$0xff] }
  0x2e   :  { %404 = vmatpush3.bf16.msra.mxu0 %v403_v9  ;;  %425 = vmatpush3.bf16.msra.mxu1 %v424_v38  ;;  %v430_v43 = vpack.c.bf16 %v198_v42, %v197_v41  ;;  %v433_v46 = vpack.c.bf16 %v200_v45, %v199_v44  ;;  %v201_v47 = vld [vmem:[#allocation4 + $0x40] sm:$0xff]  ;;  %v202_v48 = vld [vmem:[#allocation4 + $0x48] sm:$0xff]  ;;  %v203_v50 = vld [vmem:[#allocation4 + $0x50] sm:$0xff] }
  0x2f   :  { %405 = vmatprep.subr.bf16.mxu0 %v525_v2  ;;  %426 = vmatprep.subr.bf16.mxu1 %v525_v2  ;;  %v436_v49 = vpack.c.bf16 %v202_v48, %v201_v47  ;;  %v204_v51 = vld [vmem:[#allocation4 + $0x58] sm:$0xff]  ;;  %v205_v53 = vld [vmem:[#allocation4 + $0x60] sm:$0xff]  ;;  %v206_v54 = vld [vmem:[#allocation4 + $0x68] sm:$0xff] }
  0x30   :  { %v439_v52 = vpack.c.bf16 %v204_v51, %v203_v50  ;;  %v442_v55 = vpack.c.bf16 %v206_v54, %v205_v53  ;;  %v208_v20 = vld [vmem:[#allocation4 + $0x78] sm:$0xff] }
  0x31   :  { %466 = vset.pattern.permute.xlu1 %v528_v17  ;;  %467 = vset.pattern.permute.xlu0 %v529_v18 }
  0x32   :  { %75 = vperm.xlu1 %466, %v48_v3   ;;  %81 = vperm.xlu0 %467, %v48_v3  }
  0x33   :  { %407 = vmatpush3.bf16.msra.mxu0 %v406_v14  ;;  %428 = vmatpush3.bf16.msra.mxu1 %v427_v40 }
  0x34   :  { %408 = vmatprep.subr.bf16.mxu0 %v525_v2  ;;  %429 = vmatprep.subr.bf16.mxu1 %v525_v2 }
  0x36   :  { %468 = vset.pattern.permute.xlu1 %v530_v22  ;;  %470 = vset.pattern.permute.xlu0 %v531_v23  ;;  %v293_v22 = vld [vmem:[%s627_s2] ss:$0 sm:$0xff] }
  0x37   :  { %87 = vperm.xlu1 %468, %v48_v3   ;;  %410 = vmatpush3.bf16.msra.mxu0 %v409_v19  ;;  %v207_v19 = vld [vmem:[#allocation4 + $0x70] sm:$0xff] }
  0x38   :  { %411 = vmatprep.subr.bf16.mxu0 %v525_v2  ;;  %431 = vmatpush3.bf16.msra.mxu1 %v430_v43  ;;  %v445_v21 = vpack.c.bf16 %v208_v20, %v207_v19 }
  0x39   :  { %432 = vmatprep.subr.bf16.mxu1 %v525_v2 }
  0x3b   :  { %469 = vset.pattern.permute.xlu1 %v531_v23  ;;  %413 = vmatpush3.bf16.msra.mxu0 %v412_v24 }
  0x3c   :  { %93 = vperm.xlu1 %469, %v48_v3   ;;  %414 = vmatprep.subr.bf16.mxu0 %v525_v2 }
  0x3d   :  { %434 = vmatpush3.bf16.msra.mxu1 %v433_v46 }
  0x3e   :  { %435 = vmatprep.subr.bf16.mxu1 %v525_v2 }
  0x3f   :  { %416 = vmatpush3.bf16.msra.mxu0 %v415_v27 }
  0x40   :  { %417 = vmatprep.subr.bf16.mxu0 %v525_v2 }
  0x41   :  { %437 = vmatpush3.bf16.msra.mxu1 %v436_v49 }
  0x42   :  { %438 = vmatprep.subr.bf16.mxu1 %v525_v2 }
  0x43   :  { %419 = vmatpush3.bf16.msra.mxu0 %v418_v30 }
  0x44   :  { %420 = vmatprep.subr.bf16.mxu0 %v525_v2 }
  0x45   :  { %440 = vmatpush3.bf16.msra.mxu1 %v439_v52 }
  0x46   :  { %441 = vmatprep.subr.bf16.mxu1 %v525_v2 }
  0x47   :  { %422 = vmatpush3.bf16.msra.mxu0 %v421_v37 }
  0x49   :  { %443 = vmatpush3.bf16.msra.mxu1 %v442_v55 }
  0x4a   :  { %444 = vmatprep.subr.bf16.mxu1 %v525_v2 }
  0x4d   :  { %446 = vmatpush3.bf16.msra.mxu1 %v445_v21 }
  0xa7   :  { %v64_v57 = vpop.permute.xlu1 %63  ;;  %v53_v58 = vpop.permute.xlu0 %52 }
  0xa8   :  { %vm54_vm1 = vcmp.eq.s32.totalorder %v53_v58, %v50_v59  ;;  %vm65_vm2 = vcmp.eq.s32.totalorder %v64_v57, %v50_v59 }
  0xa9   :  { %v55_v62 = vsel %vm54_vm1, 1, %v524_v1  ;;  %v66_v3 = vsel %vm65_vm2, 1, %v524_v1 }
  0xac   :  { %v70_v60 = vpop.permute.xlu1 %69  ;;  %v58_v61 = vpop.permute.xlu0 %57 }
  0xad   :  { %vm59_vm3 = vcmp.eq.s32.totalorder %v58_v61, %v50_v59  ;;  %vm71_vm4 = vcmp.eq.s32.totalorder %v70_v60, %v50_v59 }
  0xae   :  { %v60_v63 = vsel %vm59_vm3, 1, %v524_v1  ;;  %v72_v6 = vsel %vm71_vm4, 1, %v524_v1 }
  0xaf   :  { %v61_v0 = vadd.s32 %v60_v63, %v55_v62 }
  0xb1   :  { %v67_v4 = vadd.s32 %v66_v3, %v61_v0  ;;  %v76_v5 = vpop.permute.xlu1 %75  ;;  %v82_v2 = vpop.permute.xlu0 %81 }
  0xb2   :  { %vm77_vm5 = vcmp.eq.s32.totalorder %v76_v5, %v50_v59  ;;  %vm83_vm6 = vcmp.eq.s32.totalorder %v82_v2, %v50_v59 }
  0xb3   :  { %v73_v7 = vadd.s32 %v72_v6, %v67_v4  ;;  %v78_v8 = vsel %vm77_vm5, 1, %v524_v1  ;;  %v84_v10 = vsel %vm83_vm6, 1, %v524_v1 }
  0xb5   :  { %v79_v9 = vadd.s32 %v78_v8, %v73_v7 }
  0xb6   :  { %v88_v11 = vpop.permute.xlu1 %87 }
  0xb7   :  { %vm89_vm7 = vcmp.eq.s32.totalorder %v88_v11, %v50_v59  ;;  %v85_v12 = vadd.s32 %v84_v10, %v79_v9 }
  0xb8   :  { %v90_v13 = vsel %vm89_vm7, 1, %v524_v1 }
  0xb9   :  { %v91_v15 = vadd.s32 %v90_v13, %v85_v12 }
  0xbb   :  { %v94_v14 = vpop.permute.xlu1 %93 }
  0xbc   :  { %vm95_vm8 = vcmp.eq.s32.totalorder %v94_v14, %v50_v59 }
  0xbd   :  { %v96_v16 = vsel %vm95_vm8, 1, %v524_v1  ;;  %v294_v1 = vld [vmem:[%s629_s4] ss:$0 sm:$0xff] }
  0xbe   :  { %v97_v17 = vadd.s32 %v96_v16, %v91_v15 }
  0xc0   :  { %v98_v18 = vcvt.s32.f32 %v97_v17 }
  0xc2   :  { %362 = vmatmul.mubr.f32.vlgmr.msra.gmra.mrb[0].mxu0 %v98_v18 }
 0x195   :  { %v188_v23 = vpop.f32.mrb[0].mxu0 }
 0x196   :  { %v189_v24 = vadd.f32 %v293_v22, %v188_v23  ;;  %v363_v25 = vpop.f32.mrb[1].mxu0 }
 0x198   :  { %v192_v26 = vmax.f32 %v189_v24, 0.0 }
 0x19a   :  { %397 = vmatmul.mubr.f32.vlgmr.msra.gmra.mrb[0].mxu1 %v192_v26 }
 0x26d   :  { %v282_v27 = vpop.f32.mrb[0].mxu1 }
 0x26e   :  { %v283_v28 = vadd.f32 %v294_v1, %v282_v27  ;;  %v398_v29 = vpop.f32.mrb[1].mxu1 }
 0x270   :  { %286 = vst [vmem:[%s630_s5] sm:$0xff] %v283_v28 }
 0x271   :  { %291 = vsyncpa [#allocation3], 1 }
 0x272   :  { %292 = vsyncpa [#allocation5], 1 }

</bundles_post_ra>
